<compile_context>
chip_gen: v5e
topology: v5e:2x2
jax: 0.10.0
libtpu: 0.0.40
codegen_flags: <defaults>
</compile_context>

<pallas_src>
from functools import partial

import jax
import jax.numpy as jnp
from jax.experimental import pallas as pl
from jax.experimental.pallas import tpu as pltpu


def _round_up(x, m):
    return ((x + m - 1) // m) * m


def _segment_matrix(w_row, groups=8):
    """Expand folded weights (S,) into a block-diagonal (groups*S, groups) matrix.

    M[j*S + t, j'] = (j == j') * w_row[t], so (B//8, 8*S) @ M gives, per packed
    row, the 8 per-batch-row dot products  a[b] . w  laid out on 8 lanes.
    """
    s = w_row.shape[0]
    eye = jnp.eye(groups, dtype=jnp.float32)                  # (8, 8)
    m = eye[:, None, :] * w_row.astype(jnp.float32)[None, :, None]   # (8, S, 8)
    return m.reshape(groups * s, groups)


def _phinet_kernel(k, *refs):
    """refs = (direct, a_0..a_{k-1}, M_0..M_{k-1}, scalars, out).

    direct : VMEM (TBR, 8)      8 batch rows per sublane-row (input dtype)
    a_i    : VMEM (TBR, 8*S_i)  lane-dense packed summary inputs (input dtype)
    M_i    : VMEM (8*S_i, 8)    block-diagonal folded weights (f32, constant)
    scalars: SMEM (2,) f32      [final_w[0] (direct scale), b_eff]
    out    : VMEM (TBR, 8) f32
    """
    d_ref = refs[0]
    a_refs = refs[1:1 + k]
    m_refs = refs[1 + k:1 + 2 * k]
    sc_ref = refs[1 + 2 * k]
    out_ref = refs[2 + 2 * k]

    # b_eff + w_direct * direct   (scalar broadcast on VPU, f32 accumulation)
    acc = d_ref[...].astype(jnp.float32) * sc_ref[0] + sc_ref[1]      # (TBR, 8)
    for i in range(k):
        a = a_refs[i][...].astype(jnp.float32)
        # Segmented per-row dot product via one tiny constant matmul; the
        # 8-wide output replaces k separate XLU lane reductions.
        acc = acc + jnp.dot(a, m_refs[i][...],
                            preferred_element_type=jnp.float32,
                            precision=jax.lax.Precision.HIGHEST)
    out_ref[...] = acc.astype(out_ref.dtype)


def phinet_forward(params, direct, *args, block_b=8192,
                   vmem_block_budget=24 * 1024 * 1024):
    """params: dict with 'sum_w' [list of (1, S_i)], 'sum_b' [list of (1,)],
    'final_w' (1, n), 'final_b' (1,).  direct: (1, B).  args[i]: (B, S_i)."""
    sum_w = params["sum_w"]
    sum_b = params["sum_b"]
    k = len(sum_w)
    n = 1 + k

    if direct.shape[0] != 1:
        raise ValueError("PhiNet kernel requires exactly one direct feature "
                         "(direct of shape (1, B))")
    if len(args) + direct.shape[0] != n:
        raise ValueError(
            f"PhiNet received {len(args) + direct.shape[0]} arguments, expected {n}")

    B = direct.shape[1]
    sizes = [a.shape[-1] for a in args]

    # --- fold the final layer into the summary weights (parameter-only work) --
    fw = jnp.reshape(params["final_w"], (n,)).astype(jnp.float32)          # (n,)
    fb = jnp.reshape(params["final_b"], ()).astype(jnp.float32)            # ()
    w_fold = [jnp.reshape(w, (s,)).astype(jnp.float32) * fw[1 + i]
              for i, (w, s) in enumerate(zip(sum_w, sizes))]               # (S_i,)
    m_mats = [_segment_matrix(w) for w in w_fold]                          # (8*S_i, 8)
    b_eff = fb + sum(fw[1 + i] * jnp.reshape(b, ()) for i, b in enumerate(sum_b))
    scalars = jnp.stack([fw[0], b_eff]).astype(jnp.float32)                # (2,)

    # --- batch tiling with lane-padding-aware VMEM math ----------------------
    # Real per-block VMEM cost (double-buffered) per batch row:
    #   direct (.., 8) padded to 128 lanes : 2 * 128*4/8 = 128 B
    #   out    (.., 8) padded to 128 lanes : 2 * 128*4/8 = 128 B
    #   a_i    (.., 8*S_i) padded to 128k  : 2 * lanes_i*4/8 = lanes_i B
    lanes = [_round_up(8 * s, 128) for s in sizes]
    bytes_per_row = 256 + sum(lanes)
    m_bytes = 2 * sum(_round_up(8 * s, 8) * 128 * 4 for s in sizes)
    cap_rows = max(64, ((vmem_block_budget - m_bytes) // bytes_per_row) // 64 * 64)

    B8 = _round_up(B, 8)
    limit = min(block_b, cap_rows)
    if B8 <= limit:
        tb, b_pad = B8, B8
    else:
        want = max(64, (limit // 64) * 64)
        tb = None
        for cand in range(want, 63, -64):       # prefer a tile that divides B8
            if B8 % cand == 0:
                tb = cand
                break
        if tb is None:                          # fallback: pad (rare, awkward B)
            tb = want
        b_pad = _round_up(B8, tb)
    num_blocks = b_pad // tb
    tbr = tb // 8

    # --- inputs: free metadata reshapes to the lane-dense packed layout ------
    d_flat = jnp.reshape(jnp.squeeze(direct), (B,))
    a_list = list(args)
    if b_pad != B:
        pad = b_pad - B
        d_flat = jnp.pad(d_flat, (0, pad))
        a_list = [jnp.pad(a, ((0, pad), (0, 0))) for a in a_list]
    d_packed = jnp.reshape(d_flat, (b_pad // 8, 8))                       # free
    a_packed = [jnp.reshape(a, (b_pad // 8, 8 * s))
                for a, s in zip(a_list, sizes)]                           # free

    in_specs = (
        [pl.BlockSpec((tbr, 8), lambda i: (i, 0))]
        + [pl.BlockSpec((tbr, 8 * s), lambda i: (i, 0)) for s in sizes]
        + [pl.BlockSpec((8 * s, 8), lambda i: (0, 0)) for s in sizes]
        + [pl.BlockSpec(memory_space=pltpu.MemorySpace.SMEM)]
    )
    out_spec = pl.BlockSpec((tbr, 8), lambda i: (i, 0))

    bytes_accessed = int(
        sum(a.size * a.dtype.itemsize for a in a_packed)
        + d_packed.size * d_packed.dtype.itemsize
        + b_pad * 4
        + sum(m.size * 4 for m in m_mats) + 2 * 4)
    cost = pl.CostEstimate(flops=2 * b_pad * 8 * sum(sizes),
                           transcendentals=0,
                           bytes_accessed=bytes_accessed)

    vmem_limit = int(min(48 * 1024 * 1024,
                         max(16 * 1024 * 1024,
                             tb * bytes_per_row + m_bytes + (4 << 20))))

    out = pl.pallas_call(
        partial(_phinet_kernel, k),
        out_shape=jax.ShapeDtypeStruct((b_pad // 8, 8), jnp.float32),
        grid=(num_blocks,),
        in_specs=in_specs,
        out_specs=out_spec,
        compiler_params=pltpu.CompilerParams(
            dimension_semantics=("parallel",),
            vmem_limit_bytes=vmem_limit,
        ),
        cost_estimate=cost,
    )(d_packed, *a_packed, *m_mats, scalars)

    return jnp.reshape(out, (b_pad, 1))[:B]                               # free


def _linear_init(key, out_features, in_features):
    """Deterministic PyTorch-style (uniform +-1/sqrt(fan_in)) init."""
    bound = 1.0 / (in_features ** 0.5)
    kw, kb = jax.random.split(key)
    w = jax.random.uniform(kw, (out_features, in_features), jnp.float32, -bound, bound)
    b = jax.random.uniform(kb, (out_features,), jnp.float32, -bound, bound)
    return w, b


if __name__ == "__main__":
    summaries = [16, 32]          # two summary Linear(s, 1) heads
    direct_count = 1              # one direct feature (required for shape consistency)
    n = direct_count + len(summaries)
    B = 1024                      # batch; with block_b=256 -> 4 grid tiles (even)

    key = jax.random.PRNGKey(0)
    k_in, k_p = jax.random.split(key)
    k_direct, k_a1, k_a2 = jax.random.split(k_in, 3)

    # inputs (PyTorch calling convention: direct has leading dim == direct_count)
    direct = jax.random.normal(k_direct, (direct_count, B), jnp.float32)   # (1, B)
    a1 = jax.random.normal(k_a1, (B, summaries[0]), jnp.float32)
    a2 = jax.random.normal(k_a2, (B, summaries[1]), jnp.float32)

    # parameters
    k_final, k_s1, k_s2 = jax.random.split(k_p, 3)
    final_w, final_b = _linear_init(k_final, 1, n)
    s1_w, s1_b = _linear_init(k_s1, 1, summaries[0])
    s2_w, s2_b = _linear_init(k_s2, 1, summaries[1])
    params = {
        "sum_w": [s1_w, s2_w],
        "sum_b": [s1_b, s2_b],
        "final_w": final_w,
        "final_b": final_b,
    }

    # block_b=256 here only to exercise multiple grid tiles at this small demo B;
    # the default (8192) is meant for production-sized batches.
    out = phinet_forward(params, direct, a1, a2, block_b=256)
    out = jax.block_until_ready(out)

    # Pure-JAX reference mirroring the torch code literally (concat + final Linear).
    inter = jnp.reshape(jnp.squeeze(direct), (B, 1))
    for (w, b), a in zip(zip(params["sum_w"], params["sum_b"]), [a1, a2]):
        col = jnp.dot(a, w.T, precision=jax.lax.Precision.HIGHEST) + b
        inter = jnp.concatenate([inter, col], axis=-1)
    ref = jnp.dot(inter, final_w.T, precision=jax.lax.Precision.HIGHEST) + final_b

    assert out.shape == (B, 1)
    assert jnp.allclose(out, ref, atol=1e-4, rtol=1e-5), (out, ref)
    print("KERNEL_OK")
</pallas_src>

<mosaic_0001>
module attributes {stable_mosaic.version = 11 : i64} {
  func.func @_phinet_kernel(%arg0: i32, %arg1: memref<32x8xf32, #tpu.memory_space<vmem>>, %arg2: memref<32x128xf32, #tpu.memory_space<vmem>>, %arg3: memref<32x256xf32, #tpu.memory_space<vmem>>, %arg4: memref<128x8xf32, #tpu.memory_space<vmem>>, %arg5: memref<256x8xf32, #tpu.memory_space<vmem>>, %arg6: memref<2xf32, #tpu.memory_space<smem>>, %arg7: memref<32x8xf32, #tpu.memory_space<vmem>>) attributes {dimension_semantics = [#tpu.dimension_semantics<parallel>], iteration_bounds = array<i64: 4>, scalar_prefetch = 0 : i64, scratch_operands = 0 : i64, tpu.core_type = #tpu.core_type<tc>, window_params = [{transform_indices = @transform_0, window_bounds = array<i64: 32, 8>}, {transform_indices = @transform_1, window_bounds = array<i64: 32, 128>}, {transform_indices = @transform_2, window_bounds = array<i64: 32, 256>}, {pipeline_mode = #tpu.pipeline_mode<synchronous>, transform_indices = @transform_3, window_bounds = array<i64: 128, 8>}, {pipeline_mode = #tpu.pipeline_mode<synchronous>, transform_indices = @transform_4, window_bounds = array<i64: 256, 8>}, {transform_indices = @transform_5, window_bounds = array<i64: 2>}, {transform_indices = @transform_6, window_bounds = array<i64: 32, 8>}]} {
    %c0 = arith.constant 0 : index
    %c0_0 = arith.constant 0 : index
    %0 = vector.load %arg1[%c0, %c0_0] : memref<32x8xf32, #tpu.memory_space<vmem>>, vector<32x8xf32>
    %c0_1 = arith.constant 0 : index
    %1 = memref.load %arg6[%c0_1] : memref<2xf32, #tpu.memory_space<smem>>
    %2 = vector.broadcast %1 : f32 to vector<32x8xf32>
    %3 = arith.mulf %0, %2 : vector<32x8xf32>
    %c1 = arith.constant 1 : index
    %4 = memref.load %arg6[%c1] : memref<2xf32, #tpu.memory_space<smem>>
    %5 = vector.broadcast %4 : f32 to vector<32x8xf32>
    %6 = arith.addf %3, %5 : vector<32x8xf32>
    %c0_2 = arith.constant 0 : index
    %c0_3 = arith.constant 0 : index
    %7 = vector.load %arg2[%c0_2, %c0_3] : memref<32x128xf32, #tpu.memory_space<vmem>>, vector<32x128xf32>
    %c0_4 = arith.constant 0 : index
    %c0_5 = arith.constant 0 : index
    %8 = vector.load %arg4[%c0_4, %c0_5] : memref<128x8xf32, #tpu.memory_space<vmem>>, vector<128x8xf32>
    %cst = arith.constant dense<0.000000e+00> : vector<32x8xf32>
    %9 = tpu.matmul %7, %8, %cst {dimension_numbers = #tpu.dot_dimension_numbers<[1], [0], [0], [1], [0, 0, 1, 1], [], []>, precision = #tpu.contract_precision<fp32>} : vector<32x128xf32>, vector<128x8xf32>, vector<32x8xf32> -> vector<32x8xf32>
    %10 = arith.addf %6, %9 : vector<32x8xf32>
    %c0_6 = arith.constant 0 : index
    %c0_7 = arith.constant 0 : index
    %11 = vector.load %arg3[%c0_6, %c0_7] : memref<32x256xf32, #tpu.memory_space<vmem>>, vector<32x256xf32>
    %c0_8 = arith.constant 0 : index
    %c0_9 = arith.constant 0 : index
    %12 = vector.load %arg5[%c0_8, %c0_9] : memref<256x8xf32, #tpu.memory_space<vmem>>, vector<256x8xf32>
    %cst_10 = arith.constant dense<0.000000e+00> : vector<32x8xf32>
    %13 = tpu.matmul %11, %12, %cst_10 {dimension_numbers = #tpu.dot_dimension_numbers<[1], [0], [0], [1], [0, 0, 1, 1], [], []>, precision = #tpu.contract_precision<fp32>} : vector<32x256xf32>, vector<256x8xf32>, vector<32x8xf32> -> vector<32x8xf32>
    %14 = arith.addf %10, %13 : vector<32x8xf32>
    %c0_11 = arith.constant 0 : index
    %c0_12 = arith.constant 0 : index
    %15 = vector.load %arg7[%c0_11, %c0_12] : memref<32x8xf32, #tpu.memory_space<vmem>>, vector<32x8xf32>
    tpu.vector_store %arg7[%c0_11, %c0_12], %14 {strides = array<i32>} : memref<32x8xf32, #tpu.memory_space<vmem>>, vector<32x8xf32>,
    return
  }
  func.func @transform_0(%arg0: i32) -> (i32, i32) {
    %c0_i32 = arith.constant 0 : i32
    %c0_i32_0 = arith.constant 0 : i32
    return %arg0, %c0_i32 : i32, i32
  }
  func.func @transform_1(%arg0: i32) -> (i32, i32) {
    %c0_i32 = arith.constant 0 : i32
    %c0_i32_0 = arith.constant 0 : i32
    return %arg0, %c0_i32 : i32, i32
  }
  func.func @transform_2(%arg0: i32) -> (i32, i32) {
    %c0_i32 = arith.constant 0 : i32
    %c0_i32_0 = arith.constant 0 : i32
    return %arg0, %c0_i32 : i32, i32
  }
  func.func @transform_3(%arg0: i32) -> (i32, i32) {
    %c0_i32 = arith.constant 0 : i32
    %c0_i32_0 = arith.constant 0 : i32
    %c0_i32_1 = arith.constant 0 : i32
    return %c0_i32, %c0_i32_0 : i32, i32
  }
  func.func @transform_4(%arg0: i32) -> (i32, i32) {
    %c0_i32 = arith.constant 0 : i32
    %c0_i32_0 = arith.constant 0 : i32
    %c0_i32_1 = arith.constant 0 : i32
    return %c0_i32, %c0_i32_0 : i32, i32
  }
  func.func @transform_5(%arg0: i32) -> i32 {
    %c0_i32 = arith.constant 0 : i32
    %c0_i32_0 = arith.constant 0 : i32
    return %c0_i32 : i32
  }
  func.func @transform_6(%arg0: i32) -> (i32, i32) {
    %c0_i32 = arith.constant 0 : i32
    %c0_i32_0 = arith.constant 0 : i32
    return %arg0, %c0_i32 : i32, i32
  }
}

</mosaic_0001>

<bundles_post_ra>
// kernel: tpu_custom_call.1
= control target key start
LH: loop header
LB: loop body
LE: loop exit
PB: predicated region body
PF: predicated region fallthrough
CT: control target
= control target key end

     0   :  { %11 = vsyncpa [#allocation3], 0  ;;  %s1933_s21 = smov 0   ;;  %s2986_s0 = inlined_call_operand.vmem [shape: f32[128,8], index: 0, kind: input, shape index: {}]   ;;  %s2987_s1 = inlined_call_operand.vmem [shape: f32[128,128], index: 1, kind: input, shape index: {}]   ;;  %s2988_s2 = inlined_call_operand.vmem [shape: f32[128,256], index: 2, kind: input, shape index: {}]   ;;  %s2989_s3 = inlined_call_operand.vmem [shape: f32[128,8], index: 3, kind: input, shape index: {}]   ;;  %s2990_s4 = inlined_call_operand.vmem [shape: f32[256,8], index: 4, kind: input, shape index: {}]   ;;  %s2991_s5 = inlined_call_operand.vmem [shape: f32[2], index: 5, kind: input, shape index: {}]   ;;  %s2992_s6 = inlined_call_operand.vmem [shape: f32[128,8], index: 6, kind: output, shape index: {}]  }
   0x1 LB: > { %s1799_s22 = sadd.s32 4294967295, %s1895_s21   ;;  %p1801_p0 = scmp.ge.s32.totalorder %s1895_s21, 1  ;;  %s1895_s21 = sphi %s1933_s21, %s17_s21  }
   0x2   : > { %p189_p1 = scmp.lt.s32.totalorder %s1895_s21, 5  ;;  %s207_s25 = sshll.u32 %s2991_s5, 4  ;;  %s208_s25 = int_to_ptr.vmem [resolvable:$true] %s207_s25 }
   0x3   : > { %p1859_p3 = scmp.eq.s32.totalorder %s1799_s22, 0  ;;  %s1897_s26 = smov [#allocation2]  }
   0x4   : > { %p190_p2 = pnand %p1801_p0, %p189_p1 }
   0x6   : > { %p1855_p4 = pneg %p190_p2  ;;  %248 = sbr.rel (%p190_p2) target bundleno = 357 (0x165), region = 44 }
   0x8   : > { %p1856_p5 = pnand %p1859_p3, %p1855_p4 }
   0xa   : > { %1858 = dma.vmem_to_smem (!%p1856_p5), %s208_s25, 16, %s1897_s26, [#allocation3]  }
   0xb   : > { %1890 = dma.done.wait (%p1859_p3), [#allocation3], 16  }
   0xc   : > { %1892 = vsyncadd (%p1859_p3), [#allocation3], 4294967280 }
   0xd   : > { %255 = sfence }
   0xe   : > { %v351_v0 = vld [vmem:[%s2989_s3 + $0x78] sm:$0xff]  ;;  %v350_v1 = vld [vmem:[%s2989_s3 + $0x70] sm:$0xff]  ;;  %v349_v2 = vld [vmem:[%s2989_s3 + $0x68] sm:$0xff]  ;;  %s1806_s9 = sshll.u32 %s1799_s22, 2  ;;  %s1815_s23 = sld [smem:[#allocation2 + $0x1]]  ;;  %vm1702_vm0 = vcmask 64512  }
   0xf   : > { %v1953_v3 = vand.u32 4294901760, %v351_v0  ;;  %v1955_v4 = vand.u32 4294901760, %v350_v1  ;;  %v1957_v5 = vand.u32 4294901760, %v349_v2  ;;  %v348_v6 = vld [vmem:[%s2989_s3 + $0x60] sm:$0xff]  ;;  %v347_v7 = vld [vmem:[%s2989_s3 + $0x58] sm:$0xff]  ;;  %v346_v8 = vld [vmem:[%s2989_s3 + $0x50] sm:$0xff] }
  0x10   : > { %v1968_v9 = vand.u32 4294901760, %v348_v6  ;;  %v1970_v10 = vand.u32 4294901760, %v347_v7  ;;  %v1972_v11 = vand.u32 4294901760, %v346_v8  ;;  %v345_v12 = vld [vmem:[%s2989_s3 + $0x48] sm:$0xff]  ;;  %v344_v13 = vld [vmem:[%s2989_s3 + $0x40] sm:$0xff]  ;;  %v343_v18 = vld [vmem:[%s2989_s3 + $0x38] sm:$0xff] }
  0x11   : > { %353 = vmatpush.msra.mxu0 %v1953_v3  ;;  %v1982_v14 = vsub.f32 %v351_v0, %v1953_v3  ;;  %600 = vmatpush.msra.mxu3 %v1953_v3  ;;  %v1986_v15 = vsub.f32 %v350_v1, %v1955_v4  ;;  %v1989_v16 = vsub.f32 %v349_v2, %v1957_v5  ;;  %v1991_v17 = vand.u32 4294901760, %v345_v12  ;;  %p292_p6 = scmp.lt.s32.totalorder %s1806_s9, 15  ;;  %v342_v29 = vld [vmem:[%s2989_s3 + $0x30] sm:$0xff]  ;;  %v341_v36 = vld [vmem:[%s2989_s3 + $0x28] sm:$0xff]  ;;  %v340_v43 = vld [vmem:[%s2989_s3 + $0x20] sm:$0xff] }
  0x12   : > { %v1997_v19 = vsub.f32 %v348_v6, %v1968_v9  ;;  %v2000_v20 = vsub.f32 %v347_v7, %v1970_v10  ;;  %v2003_v21 = vsub.f32 %v346_v8, %v1972_v11  ;;  %v2005_v22 = vand.u32 4294901760, %v344_v13  ;;  %v339_v48 = vld [vmem:[%s2989_s3 + $0x18] sm:$0xff]  ;;  %v338_v59 = vld [vmem:[%s2989_s3 + $0x10] sm:$0xff]  ;;  %v337_v1 = vld [vmem:[%s2989_s3 + $0x8] sm:$0xff] }
  0x13   : > { %355 = vmatpush.msra.mxu0 %v1955_v4  ;;  %532 = vmatpush.msra.mxu2 %v1982_v14  ;;  %v3008_v23 = vand.u32 4294901760, %v1982_v14  ;;  %v3004_v24 = vand.u32 4294901760, %v1986_v15  ;;  %v3003_v25 = vand.u32 4294901760, %v1989_v16  ;;  %s3075_s9 = smov (!%p292_p6, %s1806_s9), 15  ;;  %v2017_v27 = vsub.f32 %v345_v12, %v1991_v17  ;;  %v813_v61 = vld [vmem:[%s2990_s4 + $0x78] sm:$0xff]  ;;  %v812_v12 = vld [vmem:[%s2990_s4 + $0x70] sm:$0xff] }
  0x14   : > { %602 = vmatpush.msra.mxu3 %v1955_v4  ;;  %v3002_v26 = vand.u32 4294901760, %v1997_v19  ;;  %v2019_v28 = vand.u32 4294901760, %v343_v18  ;;  %v3001_v33 = vand.u32 4294901760, %v2000_v20  ;;  %v2038_v34 = vsub.f32 %v344_v13, %v2005_v22  ;;  %s2045_s27 = sshll.u32 %s3075_s9, 3  ;;  %s1818_s24 = sshll.u32 %s3075_s9, 4 }
  0x15   : > { %357 = vmatpush.msra.mxu0 %v1957_v5  ;;  %535 = vmatpush.msra.mxu2 %v1986_v15  ;;  %v420_v30 = vsub.f32 %v1982_v14, %v3008_v23  ;;  %v426_v31 = vsub.f32 %v1986_v15, %v3004_v24  ;;  %v432_v32 = vsub.f32 %v1989_v16, %v3003_v25  ;;  %v2999_v35 = vand.u32 4294901760, %v2003_v21  ;;  %s2072_s8 = scalar_lea.vmem %s2987_s1, %s2045_s27  ;;  %v806_v24 = vld [vmem:[%s2990_s4 + $0x40] sm:$0xff]  ;;  %s2405_s7 = scalar_lea.vmem %s2988_s2, %s1818_s24 }
  0x16   : > { %604 = vmatpush.msra.mxu3 %v1957_v5  ;;  %v438_v39 = vsub.f32 %v1997_v19, %v3002_v26  ;;  %v2052_v40 = vand.u32 4294901760, %v342_v29  ;;  %v2056_v41 = vsub.f32 %v343_v18, %v2019_v28  ;;  %v2998_v42 = vand.u32 4294901760, %v2017_v27  ;;  %v332_v55 = vld [vmem:[%s2072_s8] sm:$0xff]  ;;  %s295_s26 = scalar_lea.vmem %s2986_s0, %s2045_s27  ;;  %s314_s29 = scalar_lea.vmem %s2992_s6, %s2045_s27 }
  0x17   : > { %359 = vmatpush.msra.mxu0 %v1968_v9  ;;  %538 = vmatpush.msra.mxu2 %v1989_v16  ;;  %v421_v37 = vand.u32 4294901760, %v420_v30  ;;  %v427_v38 = vand.u32 4294901760, %v426_v31  ;;  %v433_v44 = vand.u32 4294901760, %v432_v32  ;;  %v444_v45 = vsub.f32 %v2000_v20, %v3001_v33 }
  0x18   : > { %606 = vmatpush.msra.mxu3 %v1968_v9  ;;  %v2066_v46 = vand.u32 4294901760, %v341_v36  ;;  %v450_v47 = vsub.f32 %v2003_v21, %v2999_v35  ;;  %v439_v49 = vand.u32 4294901760, %v438_v39  ;;  %v2084_v50 = vsub.f32 %v342_v29, %v2052_v40  ;;  %v336_v29 = vld [vmem:[%s2989_s3] sm:$0xff] }
  0x19   : > { %361 = vmatpush.msra.mxu0 %v1970_v10  ;;  %422 = vmatpush.msra.mxu1 %v421_v37  ;;  %v2086_v51 = vand.u32 4294901760, %v340_v43  ;;  %v2997_v52 = vand.u32 4294901760, %v2038_v34  ;;  %v456_v53 = vsub.f32 %v2017_v27, %v2998_v42  ;;  %v2996_v54 = vand.u32 4294901760, %v2056_v41 }
  0x1a   : > { %541 = vmatpush.msra.mxu2 %v1997_v19  ;;  %608 = vmatpush.msra.mxu3 %v1970_v10  ;;  %v445_v56 = vand.u32 4294901760, %v444_v45  ;;  %v2098_v57 = vsub.f32 %v341_v36, %v2066_v46  ;;  %v2100_v58 = vand.u32 4294901760, %v339_v48  ;;  %v451_v60 = vand.u32 4294901760, %v450_v47  ;;  %v811_v36 = vld [vmem:[%s2990_s4 + $0x68] sm:$0xff] }
  0x1b   : > { %363 = vmatpush.msra.mxu0 %v1972_v11  ;;  %428 = vmatpush.msra.mxu1 %v427_v38  ;;  %v462_v62 = vsub.f32 %v2038_v34, %v2997_v52  ;;  %v2115_v63 = vsub.f32 %v340_v43, %v2086_v51  ;;  %v2994_v0 = vand.u32 4294901760, %v2084_v50  ;;  %v2121_v2 = vand.u32 4294901760, %v332_v55 }
  0x1c   : > { %544 = vmatpush.msra.mxu2 %v2000_v20  ;;  %610 = vmatpush.msra.mxu3 %v1972_v11  ;;  %v457_v6 = vand.u32 4294901760, %v456_v53  ;;  %v468_v7 = vsub.f32 %v2056_v41, %v2996_v54  ;;  %v2128_v8 = vand.u32 4294901760, %v338_v59  ;;  %v2135_v13 = vsub.f32 %v339_v48, %v2100_v58 }
  0x1d   : > { %365 = vmatpush.msra.mxu0 %v1991_v17  ;;  %434 = vmatpush.msra.mxu1 %v433_v44  ;;  %v2993_v18 = vand.u32 4294901760, %v2098_v57  ;;  %v2142_v30 = vsub.f32 %v332_v55, %v2121_v2  ;;  %v2144_v31 = vand.u32 4294901760, %v813_v61  ;;  %v2148_v32 = vand.u32 4294901760, %v337_v1  ;;  %v333_v44 = vld [vmem:[%s2072_s8 + $0x8] sm:$0xff] }
  0x1e   : > { %547 = vmatpush.msra.mxu2 %v2003_v21  ;;  %612 = vmatpush.msra.mxu3 %v1991_v17  ;;  %3027 = vst [vmem:[#allocation5_spill] sm:$0xff] %v2128_v8  ;;  %v463_v37 = vand.u32 4294901760, %v462_v62  ;;  %v474_v38 = vsub.f32 %v2084_v50, %v2994_v0  ;;  %v2995_v39 = vand.u32 4294901760, %v2115_v63  ;;  %v2158_v43 = vand.u32 4294901760, %v812_v12 }
  0x1f   : > { %367 = vmatpush.msra.mxu0 %v2005_v22  ;;  %440 = vmatpush.msra.mxu1 %v439_v49  ;;  %3028 = vst [vmem:[#allocation6_spill] sm:$0xff] %v2148_v32  ;;  %v469_v45 = vand.u32 4294901760, %v468_v7  ;;  %v2164_v47 = vsub.f32 %v338_v59, %v2128_v8  ;;  %v2166_v48 = vand.u32 4294901760, %v336_v29  ;;  %v3006_v49 = vand.u32 4294901760, %v2142_v30  ;;  %v810_v59 = vld [vmem:[%s2990_s4 + $0x60] sm:$0xff] }
  0x20   : > { %550 = vmatpush.msra.mxu2 %v2017_v27  ;;  %614 = vmatpush.msra.mxu3 %v2005_v22  ;;  %v480_v53 = vsub.f32 %v2098_v57, %v2993_v18  ;;  %v3000_v55 = vand.u32 4294901760, %v2135_v13  ;;  %v2185_v62 = vsub.f32 %v337_v1, %v2148_v32  ;;  %v486_v7 = vsub.f32 %v2115_v63, %v2995_v39 }
  0x21   : > { %369 = vmatpush.msra.mxu0 %v2019_v28  ;;  %446 = vmatpush.msra.mxu1 %v445_v56  ;;  %3029 = vst [vmem:[#allocation7_spill] sm:$0xff] %v2166_v48  ;;  %v2175_v56 = vsub.f32 %v813_v61, %v2144_v31  ;;  %v475_v61 = vand.u32 4294901760, %v474_v38  ;;  %v2194_v18 = vsub.f32 %v812_v12, %v2158_v43  ;;  %v2205_v38 = vand.u32 4294901760, %v810_v59  ;;  %v809_v12 = vld [vmem:[%s2990_s4 + $0x58] sm:$0xff] }
  0x22   : > { %553 = vmatpush.msra.mxu2 %v2038_v34  ;;  %616 = vmatpush.msra.mxu3 %v2019_v28  ;;  %v387_v1 = vsub.f32 %v2142_v30, %v3006_v49  ;;  %v2202_v0 = vsub.f32 %v336_v29, %v2166_v48  ;;  %v481_v39 = vand.u32 4294901760, %v480_v53  ;;  %v492_v54 = vsub.f32 %v2135_v13, %v3000_v55  ;;  %v334_v49 = vld [vmem:[%s2072_s8 + $0x10] sm:$0xff] }
  0x23   : > { %371 = vmatpush.msra.mxu0 %v2052_v40  ;;  %452 = vmatpush.msra.mxu1 %v451_v60  ;;  %v2177_v60 = vand.u32 4294901760, %v811_v36  ;;  %3030 = vst [vmem:[#allocation8_spill] sm:$0xff] %v2194_v18  ;;  %v3007_v52 = vand.u32 4294901760, %v2175_v56  ;;  %v3009_v42 = vand.u32 4294901760, %v2185_v62  ;;  %v487_v53 = vand.u32 4294901760, %v486_v7 }
  0x24   : > { %556 = vmatpush.msra.mxu2 %v2056_v41  ;;  %618 = vmatpush.msra.mxu3 %v2052_v40  ;;  %v2229_v55 = vand.u32 4294901760, %v809_v12  ;;  %v388_v33 = vand.u32 4294901760, %v387_v1  ;;  %v3015_v26 = vand.u32 4294901760, %v2202_v0  ;;  %v2238_v25 = vsub.f32 %v810_v59, %v2205_v38 }
  0x25   : > { %373 = vmatpush.msra.mxu0 %v2066_v46  ;;  %458 = vmatpush.msra.mxu1 %v457_v6  ;;  %v2187_v6 = vand.u32 4294901760, %v333_v44  ;;  %v2216_v29 = vsub.f32 %v811_v36, %v2177_v60  ;;  %v3010_v36 = vand.u32 4294901760, %v2194_v18  ;;  %v493_v7 = vand.u32 4294901760, %v492_v54 }
  0x26   : > { %559 = vmatpush.msra.mxu2 %v2084_v50  ;;  %620 = vmatpush.msra.mxu3 %v2066_v46  ;;  %v898_v1 = vsub.f32 %v2175_v56, %v3007_v52  ;;  %v504_v59 = vsub.f32 %v2185_v62, %v3009_v42  ;;  %v2262_v52 = vsub.f32 %v809_v12, %v2229_v55 }
  0x27   : > { %375 = vmatpush.msra.mxu0 %v2086_v51  ;;  %464 = vmatpush.msra.mxu1 %v463_v37  ;;  %v3005_v37 = vand.u32 4294901760, %v2164_v47  ;;  %3031 = vst [vmem:[#allocation9_spill] sm:$0xff] %v2216_v29  ;;  %v2222_v35 = vsub.f32 %v333_v44, %v2187_v6  ;;  %v904_v54 = vsub.f32 %v2194_v18, %v3010_v36  ;;  %v2274_v36 = vand.u32 4294901760, %v334_v49 }
  0x28   : > { %562 = vmatpush.msra.mxu2 %v2098_v57  ;;  %622 = vmatpush.msra.mxu3 %v2086_v51  ;;  %v899_v12 = vand.u32 4294901760, %v898_v1  ;;  %v805_v1 = vld [vmem:[%s2990_s4 + $0x38] sm:$0xff] }
  0x29   : > { %377 = vmatpush.msra.mxu0 %v2100_v58  ;;  %470 = vmatpush.msra.mxu1 %v469_v45  ;;  %v808_v45 = vld [vmem:[%s2990_s4 + $0x50] sm:$0xff]  ;;  %v498_v44 = vsub.f32 %v2164_v47, %v3005_v37 }
  0x2a   : > { %565 = vmatpush.msra.mxu2 %v2115_v63  ;;  %624 = vmatpush.msra.mxu3 %v2100_v58  ;;  %v2248_v37 = vand.u32 4294901760, %v808_v45 }
  0x2b   : > { %379 = vmatpush.msra.mxu0 %v2128_v8  ;;  %476 = vmatpush.msra.mxu1 %v475_v61  ;;  %v807_v61 = vld [vmem:[%s2990_s4 + $0x48] sm:$0xff]  ;;  %v499_v42 = vand.u32 4294901760, %v498_v44  ;;  %v505_v44 = vand.u32 4294901760, %v504_v59 }
  0x2c   : > { %568 = vmatpush.msra.mxu2 %v2135_v13  ;;  %626 = vmatpush.msra.mxu3 %v2128_v8  ;;  %v2264_v23 = vand.u32 4294901760, %v807_v61  ;;  %v2281_v8 = vsub.f32 %v808_v45, %v2248_v37  ;;  %v905_v45 = vand.u32 4294901760, %v904_v54  ;;  %v3038_v54 = vand.u32 4294901760, %v1986_v15 }
  0x2d   : > { %381 = vmatpush.msra.mxu0 %v2148_v32  ;;  %482 = vmatpush.msra.mxu1 %v481_v39  ;;  %v2289_v39 = vand.u32 4294901760, %v806_v24  ;;  %v3039_v15 = vand.u32 4294901760, %v1989_v16 }
  0x2e   : > { %571 = vmatpush.msra.mxu2 %v2164_v47  ;;  %628 = vmatpush.msra.mxu3 %v2148_v32  ;;  %v3032_v32 = vand.u32 4294901760, %v2216_v29  ;;  %v2299_v59 = vsub.f32 %v807_v61, %v2264_v23  ;;  %v3041_v16 = vand.u32 4294901760, %v2281_v8 }
  0x2f   : > { %383 = vmatpush.msra.mxu0 %v2166_v48  ;;  %488 = vmatpush.msra.mxu1 %v487_v53  ;;  %v510_v53 = vsub.f32 %v2202_v0, %v3015_v26  ;;  %v3034_v26 = vand.u32 4294901760, %v2222_v35 }
  0x30   : > { %574 = vmatpush.msra.mxu2 %v2185_v62  ;;  %389 = vmatmul.f32.vlgmr.msra.gmra.mxu0 %v388_v33  ;;  %v910_v18 = vsub.f32 %v2216_v29, %v3032_v32  ;;  %v3033_v33 = vand.u32 4294901760, %v1982_v14  ;;  %v3035_v32 = vand.u32 4294901760, %v2142_v30  ;;  %v3019_v14 = vand.u32 4294901760, %v2262_v52  ;;  %3036 = vst [vmem:[#allocation10_spill] sm:$0xff] %v2299_v59 }
  0x31   : > { %494 = vmatpush.msra.mxu1 %v493_v7  ;;  %630 = vmatpush.msra.mxu3 %v2166_v48  ;;  %v395_v7 = vsub.f32 %v2222_v35, %v3034_v26  ;;  %v511_v26 = vand.u32 4294901760, %v510_v53  ;;  %v2306_v29 = vsub.f32 %v334_v49, %v2274_v36  ;;  %v2314_v53 = vand.u32 4294901760, %v805_v1 }
  0x32   : > { %577 = vmatpush.msra.mxu2 %v2202_v0  ;;  %659 = vmatpush.msrb.mxu0 %v3033_v33  ;;  %v3037_v33 = vand.u32 4294901760, %v2238_v25  ;;  %v911_v61 = vand.u32 4294901760, %v910_v18  ;;  %v2318_v49 = vsub.f32 %v806_v24, %v2289_v39  ;;  %v922_v18 = vsub.f32 %v2262_v52, %v3019_v14 }
  0x33   : > { %580 = vmatmul.f32.vlgmr.msra.gmra.mxu2 %v2142_v30  ;;  %634 = vmatmul.f32.vlgmr.msra.gmra.mxu3 %v3035_v32  ;;  %v804_v30 = vld [vmem:[%s2990_s4 + $0x30] sm:$0xff]  ;;  %v396_v32 = vand.u32 4294901760, %v395_v7  ;;  %v3021_v7 = vand.u32 4294901760, %v2306_v29 }
  0x34   : > { %831 = vmatpush.msrb.mxu2 %v2144_v31  ;;  %500 = vmatpush.msra.mxu1 %v499_v42  ;;  %v916_v48 = vsub.f32 %v2238_v25, %v3037_v33  ;;  %v803_v33 = vld [vmem:[%s2990_s4 + $0x28] sm:$0xff]  ;;  %v3040_v42 = vand.u32 4294901760, %v1997_v19 }
  0x35   : > { %663 = vmatpush.msrb.mxu0 %v3038_v54  ;;  %900 = vmatpush.msrb.mxu3 %v899_v12  ;;  %v3020_v12 = vand.u32 4294901760, %v2299_v59  ;;  %v2329_v54 = vand.u32 4294901760, %v804_v30  ;;  %v2342_v14 = vand.u32 4294901760, %v803_v33 }
  0x36   : > { %833 = vmatpush.msrb.mxu2 %v2158_v43  ;;  %506 = vmatpush.msra.mxu1 %v505_v44  ;;  %v335_v44 = vld [vmem:[%s2072_s8 + $0x18] sm:$0xff]  ;;  %v917_v24 = vand.u32 4294901760, %v916_v48 }
  0x37   : > { %667 = vmatpush.msrb.mxu0 %v3039_v15  ;;  %906 = vmatpush.msrb.mxu3 %v905_v45  ;;  %v928_v45 = vsub.f32 %v2281_v8, %v3041_v16  ;;  %v2340_v15 = vsub.f32 %v805_v1, %v2314_v53  ;;  %v2349_v48 = vand.u32 4294901760, %v335_v44  ;;  %v923_v1 = vand.u32 4294901760, %v922_v18 }
  0x38   : > { %835 = vmatpush.msrb.mxu2 %v2177_v60  ;;  %512 = vmatpush.msra.mxu1 %v511_v26  ;;  %v802_v26 = vld [vmem:[%s2990_s4 + $0x20] sm:$0xff]  ;;  %v2358_v16 = vsub.f32 %v804_v30, %v2329_v54  ;;  %v3043_v18 = vand.u32 4294901760, %v2222_v35 }
  0x39   : > { %671 = vmatpush.msrb.mxu0 %v3040_v42  ;;  %912 = vmatpush.msrb.mxu3 %v911_v61  ;;  %v3042_v61 = vand.u32 4294901760, %v2000_v20  ;;  %v934_v42 = vsub.f32 %v2299_v59, %v3020_v12  ;;  %v2364_v19 = vand.u32 4294901760, %v802_v26  ;;  %v801_v20 = vld [vmem:[%s2990_s4 + $0x18] sm:$0xff]  ;;  %v929_v30 = vand.u32 4294901760, %v928_v45 }
  0x3a   : > { %397 = vmatmul.f32.gmra.mxu0 %v396_v32  ;;  %514 = vmatmul.f32.vlgmr.msra.gmra.mxu1 %v2121_v2  ;;  %v403_v32 = vsub.f32 %v2306_v29, %v3021_v7  ;;  %v3045_v12 = vand.u32 4294901760, %v2318_v49  ;;  %v2384_v59 = vsub.f32 %v335_v44, %v2349_v48  ;;  %v3024_v45 = vand.u32 4294901760, %v2358_v16 }
  0x3b   : > { %837 = vmatpush.msrb.mxu2 %v2205_v38  ;;  %675 = vmatpush.msrb.mxu0 %v3042_v61  ;;  %v3025_v61 = vand.u32 4294901760, %v2340_v15  ;;  %v2397_v44 = vsub.f32 %v802_v26, %v2364_v19 }
  0x3c   : > { %738 = vmatpush.msrb.mxu1 %v1953_v3  ;;  %918 = vmatpush.msrb.mxu3 %v917_v24  ;;  %v2374_v3 = vsub.f32 %v803_v33, %v2342_v14  ;;  %v3044_v24 = vand.u32 4294901760, %v2003_v21  ;;  %v940_v7 = vsub.f32 %v2318_v49, %v3045_v12  ;;  %v935_v33 = vand.u32 4294901760, %v934_v42 }
  0x3d   : > { %585 = vmatmul.f32.gmra.mxu2 %v2222_v35  ;;  %640 = vmatmul.f32.gmra.mxu3 %v3043_v18  ;;  %v800_v35 = vld [vmem:[%s2990_s4 + $0x10] sm:$0xff]  ;;  %v2391_v18 = vand.u32 4294901760, %v801_v20  ;;  %v3046_v21 = vand.u32 4294901760, %v2017_v27  ;;  %v404_v12 = vand.u32 4294901760, %v403_v32  ;;  %v410_v32 = vand.u32 4294901760, %v2384_v59 }
  0x3e   : > { %839 = vmatpush.msrb.mxu2 %v2229_v55  ;;  %679 = vmatpush.msrb.mxu0 %v3044_v24  ;;  %v799_v24 = vld [vmem:[%s2990_s4 + $0x8] sm:$0xff]  ;;  %v3026_v27 = vand.u32 4294901760, %v2374_v3  ;;  %v2412_v26 = vand.u32 4294901760, %v800_v35  ;;  %v941_v42 = vand.u32 4294901760, %v940_v7  ;;  %v963_v7 = vand.u32 4294901760, %v2397_v44 }
  0x3f   : > { %740 = vmatpush.msrb.mxu1 %v1955_v4  ;;  %924 = vmatpush.msrb.mxu3 %v923_v1  ;;  %v946_v4 = vsub.f32 %v2340_v15, %v3025_v61  ;;  %v3047_v1 = vand.u32 4294901760, %v2038_v34  ;;  %v798_v34 = vld [vmem:[%s2990_s4] sm:$0xff] }
  0x40   : > { %841 = vmatpush.msrb.mxu2 %v2248_v37  ;;  %683 = vmatpush.msrb.mxu0 %v3046_v21  ;;  %v2425_v21 = vand.u32 4294901760, %v799_v24  ;;  %v2444_v61 = vand.u32 4294901760, %v798_v34 }
  0x41   : > { %742 = vmatpush.msrb.mxu1 %v1957_v5  ;;  %930 = vmatpush.msrb.mxu3 %v929_v30  ;;  %v952_v5 = vsub.f32 %v2358_v16, %v3024_v45  ;;  %v2423_v30 = vsub.f32 %v801_v20, %v2391_v18  ;;  %v958_v20 = vsub.f32 %v2374_v3, %v3026_v27 }
  0x42   : > { %843 = vmatpush.msrb.mxu2 %v2264_v23  ;;  %687 = vmatpush.msrb.mxu0 %v3047_v1  ;;  %v947_v1 = vand.u32 4294901760, %v946_v4  ;;  %v2440_v45 = vsub.f32 %v800_v35, %v2412_v26  ;;  %v2451_v27 = vsub.f32 %v799_v24, %v2425_v21  ;;  %v3051_v24 = vand.u32 4294901760, %v2098_v57 }
  0x43   : > { %744 = vmatpush.msrb.mxu1 %v1968_v9  ;;  %936 = vmatpush.msrb.mxu3 %v935_v33  ;;  %v790_v9 = vld [vmem:[%s2405_s7] sm:$0xff]  ;;  %v3048_v33 = vand.u32 4294901760, %v2056_v41  ;;  %v3049_v41 = vand.u32 4294901760, %v2306_v29  ;;  %v953_v4 = vand.u32 4294901760, %v952_v5  ;;  %v3052_v57 = vand.u32 4294901760, %v2115_v63 }
  0x44   : > { %405 = vmatmul.f32.gmra.mxu0 %v404_v12  ;;  %518 = vmatmul.f32.gmra.mxu1 %v2187_v6  ;;  %v411_v12 = vsub.f32 %v2384_v59, %v410_v32  ;;  %v2453_v35 = vand.u32 4294901760, %v790_v9  ;;  %v975_v5 = vand.u32 4294901760, %v2440_v45 }
  0x45   : > { %845 = vmatpush.msrb.mxu2 %v2289_v39  ;;  %691 = vmatpush.msrb.mxu0 %v3048_v33  ;;  %v969_v33 = vand.u32 4294901760, %v2423_v30 }
  0x46   : > { %746 = vmatpush.msrb.mxu1 %v1970_v10  ;;  %942 = vmatpush.msrb.mxu3 %v941_v42  ;;  %v3050_v10 = vand.u32 4294901760, %v2084_v50  ;;  %v964_v42 = vsub.f32 %v2397_v44, %v963_v7  ;;  %v2467_v50 = vsub.f32 %v798_v34, %v2444_v61  ;;  %v792_v34 = vld [vmem:[%s2405_s7 + $0x10] sm:$0xff] }
  0x47   : > { %590 = vmatmul.f32.gmra.mxu2 %v2306_v29  ;;  %646 = vmatmul.f32.gmra.mxu3 %v3049_v41  ;;  %v959_v29 = vand.u32 4294901760, %v958_v20  ;;  %v412_v41 = vand.u32 4294901760, %v411_v12  ;;  %v2475_v20 = vsub.f32 %v790_v9, %v2453_v35 }
  0x48   : > { %847 = vmatpush.msrb.mxu2 %v2314_v53  ;;  %695 = vmatpush.msrb.mxu0 %v3050_v10  ;;  %v965_v12 = vand.u32 4294901760, %v964_v42  ;;  %v987_v9 = vand.u32 4294901760, %v2467_v50  ;;  %v2495_v42 = vand.u32 4294901760, %v792_v34 }
  0x49   : > { %748 = vmatpush.msrb.mxu1 %v1972_v11  ;;  %948 = vmatpush.msrb.mxu3 %v947_v1  ;;  %v970_v11 = vsub.f32 %v2423_v30, %v969_v33  ;;  %v981_v1 = vand.u32 4294901760, %v2451_v27  ;;  %v864_v10 = vand.u32 4294901760, %v2475_v20 }
  0x4a   : > { %849 = vmatpush.msrb.mxu2 %v2329_v54  ;;  %699 = vmatpush.msrb.mxu0 %v3051_v24  ;;  %v988_v24 = vsub.f32 %v2467_v50, %v987_v9 }
  0x4b   : > { %750 = vmatpush.msrb.mxu1 %v1991_v17  ;;  %954 = vmatpush.msrb.mxu3 %v953_v4  ;;  %v976_v17 = vsub.f32 %v2440_v45, %v975_v5  ;;  %v3053_v4 = vand.u32 4294901760, %v2135_v13  ;;  %v971_v63 = vand.u32 4294901760, %v970_v11  ;;  %v3054_v13 = vand.u32 4294901760, %v2164_v47 }
  0x4c   : > { %851 = vmatpush.msrb.mxu2 %v2342_v14  ;;  %703 = vmatpush.msrb.mxu0 %v3052_v57  ;;  %v2512_v47 = vsub.f32 %v792_v34, %v2495_v42  ;;  %v794_v57 = vld [vmem:[%s2405_s7 + $0x20] sm:$0xff]  ;;  %v3061_v34 = vld [vmem:[#allocation6_spill] sm:$0xff] }
  0x4d   : > { %752 = vmatpush.msrb.mxu1 %v2005_v22  ;;  %960 = vmatpush.msrb.mxu3 %v959_v29  ;;  %v982_v22 = vsub.f32 %v2451_v27, %v981_v1  ;;  %v977_v29 = vand.u32 4294901760, %v976_v17  ;;  %v3059_v17 = vld [vmem:[#allocation8_spill] sm:$0xff] }
  0x4e   : > { %413 = vmatmul.f32.gmra.mxu0 %v412_v41  ;;  %522 = vmatmul.f32.gmra.mxu1 %v2274_v36  ;;  %v989_v41 = vand.u32 4294901760, %v988_v24  ;;  %v3065_v24 = vand.u32 4294901760, %v2238_v25 }
  0x4f   : > { %853 = vmatpush.msrb.mxu2 %v2364_v19  ;;  %707 = vmatpush.msrb.mxu0 %v3053_v4 }
  0x50   : > { %754 = vmatpush.msrb.mxu1 %v2019_v28  ;;  %966 = vmatpush.msrb.mxu3 %v965_v12  ;;  %v983_v28 = vand.u32 4294901760, %v982_v22  ;;  %v3064_v22 = vld [vmem:[#allocation7_spill] sm:$0xff] }
  0x51   : > { %595 = vmatmul.f32.gmra.mxu2 %v2384_v59  ;;  %652 = vmatmul.f32.gmra.mxu3 %v410_v32  ;;  %v865_v59 = vsub.f32 %v2475_v20, %v864_v10  ;;  %v3055_v32 = vand.u32 4294901760, %v2185_v62  ;;  %v872_v62 = vand.u32 4294901760, %v2512_v47 }
  0x52   : > { %855 = vmatpush.msrb.mxu2 %v2391_v18  ;;  %711 = vmatpush.msrb.mxu0 %v3054_v13  ;;  %v796_v13 = vld [vmem:[%s2405_s7 + $0x30] sm:$0xff] }
  0x53   : > { %756 = vmatpush.msrb.mxu1 %v2052_v40  ;;  %972 = vmatpush.msrb.mxu3 %v971_v63  ;;  %v3056_v40 = vand.u32 4294901760, %v2202_v0  ;;  %v866_v11 = vand.u32 4294901760, %v865_v59  ;;  %v3058_v0 = vld [vmem:[#allocation5_spill] sm:$0xff]  ;;  %v873_v12 = vsub.f32 %v2512_v47, %v872_v62  ;;  %v2558_v59 = vand.u32 4294901760, %v796_v13 }
  0x54   : > { %857 = vmatpush.msrb.mxu2 %v2412_v26  ;;  %715 = vmatpush.msrb.mxu0 %v3055_v32  ;;  %v3068_v32 = vld [vmem:[#allocation10_spill] sm:$0xff] }
  0x55   : > { %758 = vmatpush.msrb.mxu1 %v2066_v46  ;;  %978 = vmatpush.msrb.mxu3 %v977_v29  ;;  %v2526_v46 = vand.u32 4294901760, %v794_v57  ;;  %v874_v29 = vand.u32 4294901760, %v873_v12  ;;  %v821_v12 = vld [vmem:[%s2990_s4 + $0xb8] sm:$0xff] }
  0x56   : > { %859 = vmatpush.msrb.mxu2 %v2425_v21  ;;  %719 = vmatpush.msrb.mxu0 %v3056_v40  ;;  %v3069_v40 = vand.u32 4294901760, %v3068_v32 }
  0x57   : > { %760 = vmatpush.msrb.mxu1 %v2086_v51  ;;  %984 = vmatpush.msrb.mxu3 %v983_v28  ;;  %v3057_v51 = vand.u32 4294901760, %v2175_v56  ;;  %v2541_v4 = vsub.f32 %v794_v57, %v2526_v46 }
  0x58   : > { %526 = vmatmul.f32.gmra.mxu1 %v2349_v48  ;;  %721 = vmatmul.f32.vlgmr.msrb.gmra.mxu0 %v2121_v2 }
  0x59   : > { %861 = vmatpush.msrb.mxu2 %v2444_v61  ;;  %762 = vmatpush.msrb.mxu1 %v2100_v58  ;;  %v3060_v58 = vand.u32 4294901760, %v3059_v17  ;;  %v880_v28 = vand.u32 4294901760, %v2541_v4 }
  0x5a   : > { %990 = vmatpush.msrb.mxu3 %v989_v41  ;;  %1010 = vmatpush.msra.mxu0 %v2175_v56  ;;  %v3062_v56 = vld [vmem:[#allocation9_spill] sm:$0xff] }
  0x5b   : > { %867 = vmatmul.f32.vlgmr.msrb.gmra.mxu2 %v866_v11  ;;  %992 = vmatmul.f32.vlgmr.msrb.gmra.mxu3 %v2453_v35  ;;  %v3063_v63 = vand.u32 4294901760, %v3062_v56 }
  0x5c   : > { %1137 = vmatpush.msra.mxu2 %v3057_v51  ;;  %764 = vmatpush.msrb.mxu1 %v3058_v0 }
  0x5d   : > { %1013 = vmatpush.msra.mxu0 %v3059_v17  ;;  %1216 = vmatpush.msra.mxu3 %v2144_v31 }
  0x5e   : > { %1141 = vmatpush.msra.mxu2 %v3060_v58  ;;  %766 = vmatpush.msrb.mxu1 %v3061_v34  ;;  %v820_v58 = vld [vmem:[%s2990_s4 + $0xb0] sm:$0xff] }
  0x5f   : > { %1016 = vmatpush.msra.mxu0 %v3062_v56  ;;  %1218 = vmatpush.msra.mxu3 %v2158_v43  ;;  %v2725_v56 = vand.u32 4294901760, %v821_v12 }
  0x60   : > { %1145 = vmatpush.msra.mxu2 %v3063_v63  ;;  %768 = vmatpush.msrb.mxu1 %v3064_v22 }
  0x61   : > { %1019 = vmatpush.msra.mxu0 %v2238_v25  ;;  %770 = vmatmul.f32.vlgmr.msrb.gmra.mxu1 %v2121_v2  ;;  %v3066_v2 = vand.u32 4294901760, %v2262_v52  ;;  %v881_v25 = vsub.f32 %v2541_v4, %v880_v28 }
  0x62   : > { %725 = vmatmul.f32.gmra.mxu0 %v2187_v6  ;;  %1149 = vmatpush.msra.mxu2 %v3065_v24  ;;  %v819_v24 = vld [vmem:[%s2990_s4 + $0xa8] sm:$0xff] }
  0x63   : > { %1220 = vmatpush.msra.mxu3 %v2177_v60  ;;  %1022 = vmatpush.msra.mxu0 %v2262_v52  ;;  %v2574_v52 = vsub.f32 %v796_v13, %v2558_v59  ;;  %v2731_v13 = vand.u32 4294901760, %v820_v58 }
  0x64   : > { %1078 = vmatpush.msra.mxu1 %v2144_v31  ;;  %875 = vmatmul.f32.gmra.mxu2 %v874_v29  ;;  %v3067_v31 = vand.u32 4294901760, %v2281_v8 }
  0x65   : > { %996 = vmatmul.f32.gmra.mxu3 %v2495_v42  ;;  %1153 = vmatpush.msra.mxu2 %v3066_v2  ;;  %v888_v41 = vand.u32 4294901760, %v2574_v52 }
  0x66   : > { %1222 = vmatpush.msra.mxu3 %v2205_v38  ;;  %1025 = vmatpush.msra.mxu0 %v2281_v8  ;;  %v3070_v8 = vand.u32 4294901760, %v2318_v49 }
  0x67   : > { %1080 = vmatpush.msra.mxu1 %v2158_v43  ;;  %1157 = vmatpush.msra.mxu2 %v3067_v31  ;;  %v882_v43 = vand.u32 4294901760, %v881_v25  ;;  %v1378_v31 = vsub.f32 %v821_v12, %v2725_v56 }
  0x68   : > { %1224 = vmatpush.msra.mxu3 %v2229_v55  ;;  %1028 = vmatpush.msra.mxu0 %v3068_v32 }
  0x69   : > { %1082 = vmatpush.msra.mxu1 %v2177_v60  ;;  %1161 = vmatpush.msra.mxu2 %v3069_v40  ;;  %v3071_v60 = vand.u32 4294901760, %v2340_v15  ;;  %v818_v40 = vld [vmem:[%s2990_s4 + $0xa0] sm:$0xff] }
  0x6a   : > { %1226 = vmatpush.msra.mxu3 %v2248_v37  ;;  %1031 = vmatpush.msra.mxu0 %v2318_v49 }
  0x6b   : > { %1084 = vmatpush.msra.mxu1 %v2205_v38  ;;  %729 = vmatmul.f32.gmra.mxu0 %v2274_v36  ;;  %v3072_v38 = vand.u32 4294901760, %v2358_v16 }
  0x6c   : > { %774 = vmatmul.f32.gmra.mxu1 %v2187_v6  ;;  %1165 = vmatpush.msra.mxu2 %v3070_v8  ;;  %v889_v6 = vsub.f32 %v2574_v52, %v888_v41  ;;  %v2749_v8 = vand.u32 4294901760, %v819_v24 }
  0x6d   : > { %1228 = vmatpush.msra.mxu3 %v2264_v23  ;;  %1034 = vmatpush.msra.mxu0 %v2340_v15  ;;  %v827_v15 = vld [vmem:[%s2990_s4 + $0xe8] sm:$0xff] }
  0x6e   : > { %1086 = vmatpush.msra.mxu1 %v2229_v55  ;;  %883 = vmatmul.f32.gmra.mxu2 %v882_v43  ;;  %v3073_v55 = vand.u32 4294901760, %v2374_v3  ;;  %v890_v49 = vand.u32 4294901760, %v889_v6  ;;  %v791_v43 = vld [vmem:[%s2405_s7 + $0x8] sm:$0xff]  ;;  %v1384_v6 = vsub.f32 %v820_v58, %v2731_v13 }
  0x6f   : > { %1000 = vmatmul.f32.gmra.mxu3 %v2526_v46  ;;  %1169 = vmatpush.msra.mxu2 %v3071_v60 }
  0x70   : > { %1230 = vmatpush.msra.mxu3 %v2289_v39  ;;  %1037 = vmatpush.msra.mxu0 %v2358_v16  ;;  %v826_v16 = vld [vmem:[%s2990_s4 + $0xe0] sm:$0xff] }
  0x71   : > { %1088 = vmatpush.msra.mxu1 %v2248_v37  ;;  %1173 = vmatpush.msra.mxu2 %v3072_v38  ;;  %v829_v37 = vld [vmem:[%s2990_s4 + $0xf8] sm:$0xff] }
  0x72   : > { %1232 = vmatpush.msra.mxu3 %v2314_v53  ;;  %1040 = vmatpush.msra.mxu0 %v2374_v3  ;;  %v2646_v3 = vand.u32 4294901760, %v827_v15  ;;  %v817_v38 = vld [vmem:[%s2990_s4 + $0x98] sm:$0xff] }
  0x73   : > { %1090 = vmatpush.msra.mxu1 %v2264_v23  ;;  %1177 = vmatpush.msra.mxu2 %v3073_v55  ;;  %v828_v23 = vld [vmem:[%s2990_s4 + $0xf0] sm:$0xff] }
  0x74   : > { %1234 = vmatpush.msra.mxu3 %v2329_v54  ;;  %1043 = vmatpush.msra.mxu0 %v2397_v44 }
  0x75   : > { %1092 = vmatpush.msra.mxu1 %v2289_v39  ;;  %733 = vmatmul.f32.gmra.mxu0 %v2349_v48  ;;  %v2622_v39 = vand.u32 4294901760, %v829_v37 }
  0x76   : > { %778 = vmatmul.f32.gmra.mxu1 %v2274_v36  ;;  %1181 = vmatpush.msra.mxu2 %v963_v7  ;;  %v2629_v36 = vand.u32 4294901760, %v828_v23 }
  0x77   : > { %1236 = vmatpush.msra.mxu3 %v2342_v14  ;;  %1046 = vmatpush.msra.mxu0 %v2423_v30 }
  0x78   : > { %1094 = vmatpush.msra.mxu1 %v2314_v53  ;;  %891 = vmatmul.f32.gmra.mxu2 %v890_v49  ;;  %v1330_v53 = vsub.f32 %v829_v37, %v2622_v39  ;;  %v2759_v49 = vand.u32 4294901760, %v818_v40  ;;  %v2761_v37 = vand.u32 4294901760, %v791_v43 }
  0x79   : > { %1004 = vmatmul.f32.gmra.mxu3 %v2558_v59  ;;  %1185 = vmatpush.msra.mxu2 %v969_v33 }
  0x7a   : > { %1238 = vmatpush.msra.mxu3 %v2364_v19  ;;  %1049 = vmatpush.msra.mxu0 %v2440_v45  ;;  %v2653_v45 = vand.u32 4294901760, %v826_v16  ;;  %v2661_v44 = vand.u32 4294901760, %v1330_v53 }
  0x7b   : > { %1096 = vmatpush.msra.mxu1 %v2329_v54  ;;  %1189 = vmatpush.msra.mxu2 %v975_v5  ;;  %v1336_v54 = vsub.f32 %v828_v23, %v2629_v36  ;;  %v823_v5 = vld [vmem:[%s2990_s4 + $0xc8] sm:$0xff]  ;;  %v2765_v23 = vand.u32 4294901760, %v1378_v31 }
  0x7c   : > { %1240 = vmatpush.msra.mxu3 %v2391_v18  ;;  %1052 = vmatpush.msra.mxu0 %v2451_v27  ;;  %v824_v27 = vld [vmem:[%s2990_s4 + $0xd0] sm:$0xff]  ;;  %v1348_v7 = vsub.f32 %v826_v16, %v2653_v45 }
  0x7d   : > { %1098 = vmatpush.msra.mxu1 %v2342_v14  ;;  %1193 = vmatpush.msra.mxu2 %v981_v1  ;;  %v825_v14 = vld [vmem:[%s2990_s4 + $0xd8] sm:$0xff]  ;;  %v2680_v33 = vand.u32 4294901760, %v824_v27 }
  0x7e   : > { %1242 = vmatpush.msra.mxu3 %v2412_v26  ;;  %1055 = vmatpush.msra.mxu0 %v2467_v50  ;;  %v2673_v30 = vand.u32 4294901760, %v825_v14  ;;  %v2696_v11 = vand.u32 4294901760, %v1348_v7 }
  0x7f   : > { %1100 = vmatpush.msra.mxu1 %v2364_v19  ;;  %1058 = vmatmul.f32.vlgmr.msra.gmra.mxu0 %v2475_v20  ;;  %v1342_v19 = vsub.f32 %v827_v15, %v2646_v3  ;;  %v1360_v57 = vsub.f32 %v824_v27, %v2680_v33  ;;  %v815_v27 = vld [vmem:[%s2990_s4 + $0x88] sm:$0xff] }
  0x80   : > { %782 = vmatmul.f32.gmra.mxu1 %v2349_v48  ;;  %1197 = vmatpush.msra.mxu2 %v987_v9  ;;  %v2671_v48 = vand.u32 4294901760, %v1336_v54  ;;  %v822_v9 = vld [vmem:[%s2990_s4 + $0xc0] sm:$0xff] }
  0x81   : > { %1244 = vmatpush.msra.mxu3 %v2425_v21  ;;  %1102 = vmatpush.msra.mxu1 %v2391_v18  ;;  %v1332_v18 = vsub.f32 %v1330_v53, %v2661_v44  ;;  %v2686_v50 = vand.u32 4294901760, %v1342_v19  ;;  %v2707_v0 = vand.u32 4294901760, %v822_v9  ;;  %v2723_v34 = vand.u32 4294901760, %v1360_v57 }
  0x82   : > { %1265 = vmatpush.msrb.mxu0 %v2622_v39  ;;  %1199 = vmatmul.f32.vlgmr.msra.gmra.mxu2 %v2453_v35  ;;  %v1338_v1 = vsub.f32 %v1336_v54, %v2671_v48 }
  0x83   : > { %1246 = vmatpush.msra.mxu3 %v2444_v61  ;;  %1444 = vmatpush.msrb.mxu2 %v1330_v53  ;;  %v1344_v51 = vsub.f32 %v1342_v19, %v2686_v50  ;;  %v1372_v22 = vsub.f32 %v822_v9, %v2707_v0  ;;  %v1362_v32 = vsub.f32 %v1360_v57, %v2723_v34 }
  0x84   : > { %1104 = vmatpush.msra.mxu1 %v2412_v26  ;;  %1267 = vmatpush.msrb.mxu0 %v2629_v36  ;;  %v1354_v26 = vsub.f32 %v825_v14, %v2673_v30  ;;  %v1339_v17 = vand.u32 4294901760, %v1338_v1  ;;  %v1390_v53 = vsub.f32 %v819_v24, %v2749_v8  ;;  %v816_v14 = vld [vmem:[%s2990_s4 + $0x90] sm:$0xff] }
  0x85   : > { %1248 = vmatmul.f32.vlgmr.msra.gmra.mxu3 %v2453_v35  ;;  %1447 = vmatpush.msrb.mxu2 %v1336_v54  ;;  %v2698_v35 = vand.u32 4294901760, %v823_v5  ;;  %v1345_v63 = vand.u32 4294901760, %v1344_v51  ;;  %v1363_v15 = vand.u32 4294901760, %v1362_v32  ;;  %v2771_v54 = vand.u32 4294901760, %v817_v38 }
  0x86   : > { %1512 = vmatpush.msrb.mxu3 %v2622_v39  ;;  %1106 = vmatpush.msra.mxu1 %v2425_v21  ;;  %v1333_v21 = vand.u32 4294901760, %v1332_v18  ;;  %v1380_v18 = vsub.f32 %v1378_v31, %v2765_v23  ;;  %v2801_v51 = vand.u32 4294901760, %v815_v27 }
  0x87   : > { %1269 = vmatpush.msrb.mxu0 %v2646_v3  ;;  %1450 = vmatpush.msrb.mxu2 %v1342_v19  ;;  %v1366_v20 = vsub.f32 %v823_v5, %v2698_v35  ;;  %v1396_v19 = vsub.f32 %v818_v40, %v2759_v49  ;;  %v2789_v5 = vand.u32 4294901760, %v816_v14  ;;  %v1402_v9 = vsub.f32 %v817_v38, %v2771_v54 }
  0x88   : > { %1514 = vmatpush.msrb.mxu3 %v2629_v36  ;;  %1108 = vmatpush.msra.mxu1 %v2444_v61  ;;  %v2713_v61 = vand.u32 4294901760, %v1354_v26  ;;  %v1414_v24 = vsub.f32 %v815_v27, %v2801_v51 }
  0x89   : > { %1271 = vmatpush.msrb.mxu0 %v2653_v45  ;;  %1112 = vmatmul.f32.vlgmr.msra.gmra.mxu1 %v864_v10  ;;  %v1350_v10 = vsub.f32 %v1348_v7, %v2696_v11  ;;  %v2737_v2 = vand.u32 4294901760, %v1366_v20 }
  0x8a   : > { %1063 = vmatmul.f32.gmra.mxu0 %v2512_v47  ;;  %1453 = vmatpush.msrb.mxu2 %v1348_v7  ;;  %v1356_v29 = vsub.f32 %v1354_v26, %v2713_v61  ;;  %v2777_v47 = vand.u32 4294901760, %v1384_v6  ;;  %v2785_v7 = vsub.f32 %v791_v43, %v2761_v37 }
  0x8b   : > { %1516 = vmatpush.msrb.mxu3 %v2646_v3  ;;  %1273 = vmatpush.msrb.mxu0 %v2673_v30  ;;  %v1351_v25 = vand.u32 4294901760, %v1350_v10  ;;  %v1368_v55 = vsub.f32 %v1366_v20, %v2737_v2  ;;  %v1408_v10 = vsub.f32 %v816_v14, %v2789_v5 }
  0x8c   : > { %1334 = vmatpush.msrb.mxu1 %v1333_v21  ;;  %1203 = vmatmul.f32.gmra.mxu2 %v2495_v42  ;;  %v1357_v60 = vand.u32 4294901760, %v1356_v29  ;;  %v814_v21 = vld [vmem:[%s2990_s4 + $0x80] sm:$0xff]  ;;  %v1298_v12 = vand.u32 4294901760, %v2785_v7 }
  0x8d   : > { %1456 = vmatpush.msrb.mxu2 %v1354_v26  ;;  %1518 = vmatpush.msrb.mxu3 %v2653_v45  ;;  %v2792_v26 = vand.u32 4294901760, %v1390_v53  ;;  %v2810_v58 = vand.u32 4294901760, %v814_v21 }
  0x8e   : > { %1275 = vmatpush.msrb.mxu0 %v2680_v33  ;;  %1340 = vmatpush.msrb.mxu1 %v1339_v17  ;;  %v793_v17 = vld [vmem:[%s2405_s7 + $0x18] sm:$0xff]  ;;  %v1299_v32 = vsub.f32 %v2785_v7, %v1298_v12 }
  0x8f   : > { %1252 = vmatmul.f32.gmra.mxu3 %v2495_v42  ;;  %1459 = vmatpush.msrb.mxu2 %v1360_v57  ;;  %v2747_v42 = vand.u32 4294901760, %v1372_v22  ;;  %v1386_v57 = vsub.f32 %v1384_v6, %v2777_v47 }
  0x90   : > { %1520 = vmatpush.msrb.mxu3 %v2673_v30  ;;  %1277 = vmatpush.msrb.mxu0 %v2698_v35 }
  0x91   : > { %1346 = vmatpush.msrb.mxu1 %v1345_v63  ;;  %1462 = vmatpush.msrb.mxu2 %v1366_v20  ;;  %v1374_v16 = vsub.f32 %v1372_v22, %v2747_v42  ;;  %v1381_v20 = vand.u32 4294901760, %v1380_v18  ;;  %v2813_v63 = vand.u32 4294901760, %v1402_v9  ;;  %v1387_v29 = vand.u32 4294901760, %v1386_v57 }
  0x92   : > { %1522 = vmatpush.msrb.mxu3 %v2680_v33  ;;  %1279 = vmatpush.msrb.mxu0 %v2707_v0 }
  0x93   : > { %1352 = vmatpush.msrb.mxu1 %v1351_v25  ;;  %1068 = vmatmul.f32.gmra.mxu0 %v2541_v4  ;;  %v1375_v1 = vand.u32 4294901760, %v1374_v16  ;;  %v2819_v25 = vand.u32 4294901760, %v793_v17  ;;  %v2828_v4 = vand.u32 4294901760, %v1408_v10  ;;  %v1404_v43 = vsub.f32 %v1402_v9, %v2813_v63  ;;  %v795_v16 = vld [vmem:[%s2405_s7 + $0x28] sm:$0xff] }
  0x94   : > { %1118 = vmatmul.f32.gmra.mxu1 %v872_v62  ;;  %1465 = vmatpush.msrb.mxu2 %v1372_v22  ;;  %v1369_v62 = vand.u32 4294901760, %v1368_v55  ;;  %v1392_v22 = vsub.f32 %v1390_v53, %v2792_v26  ;;  %v1300_v55 = vand.u32 4294901760, %v1299_v32 }
  0x95   : > { %1524 = vmatpush.msrb.mxu3 %v2698_v35  ;;  %1281 = vmatpush.msrb.mxu0 %v2725_v56  ;;  %v1405_v14 = vand.u32 4294901760, %v1404_v43 }
  0x96   : > { %1358 = vmatpush.msrb.mxu1 %v1357_v60  ;;  %1207 = vmatmul.f32.gmra.mxu2 %v2526_v46  ;;  %v1393_v40 = vand.u32 4294901760, %v1392_v22  ;;  %v2834_v60 = vand.u32 4294901760, %v1414_v24 }
  0x97   : > { %1468 = vmatpush.msrb.mxu2 %v1378_v31  ;;  %1526 = vmatpush.msrb.mxu3 %v2707_v0 }
  0x98   : > { %1283 = vmatpush.msrb.mxu0 %v2731_v13  ;;  %1364 = vmatpush.msrb.mxu1 %v1363_v15 }
  0x99   : > { %1256 = vmatmul.f32.gmra.mxu3 %v2526_v46  ;;  %1471 = vmatpush.msrb.mxu2 %v1384_v6  ;;  %v2803_v46 = vand.u32 4294901760, %v1396_v19  ;;  %v2837_v6 = vsub.f32 %v793_v17, %v2819_v25  ;;  %v797_v17 = vld [vmem:[%s2405_s7 + $0x38] sm:$0xff]  ;;  %s320_s7 = sld [smem:[#allocation2]] }
  0x9a   : > { %1528 = vmatpush.msrb.mxu3 %v2725_v56  ;;  %1285 = vmatpush.msrb.mxu0 %v2749_v8 }
  0x9b   : > { %1370 = vmatpush.msrb.mxu1 %v1369_v62  ;;  %1474 = vmatpush.msrb.mxu2 %v1390_v53  ;;  %v1398_v31 = vsub.f32 %v1396_v19, %v2803_v46  ;;  %v1410_v53 = vsub.f32 %v1408_v10, %v2828_v4  ;;  %v1306_v62 = vand.u32 4294901760, %v2837_v6 }
  0x9c   : > { %1530 = vmatpush.msrb.mxu3 %v2731_v13  ;;  %1287 = vmatpush.msrb.mxu0 %v2759_v49 }
  0x9d   : > { %1376 = vmatpush.msrb.mxu1 %v1375_v1  ;;  %1073 = vmatmul.f32.gmra.mxu0 %v2574_v52  ;;  %v1399_v38 = vand.u32 4294901760, %v1398_v31  ;;  %v1411_v27 = vand.u32 4294901760, %v1410_v53 }
  0x9e   : > { %1124 = vmatmul.f32.gmra.mxu1 %v880_v28  ;;  %1477 = vmatpush.msrb.mxu2 %v1396_v19  ;;  %v1420_v28 = vsub.f32 %v814_v21, %v2810_v58  ;;  %v2850_v19 = vand.u32 4294901760, %v795_v16 }
  0x9f   : > { %1532 = vmatpush.msrb.mxu3 %v2749_v8  ;;  %1289 = vmatpush.msrb.mxu0 %v2771_v54 }
  0xa0   : > { %1382 = vmatpush.msrb.mxu1 %v1381_v20  ;;  %1211 = vmatmul.f32.gmra.mxu2 %v2558_v59  ;;  %v2842_v15 = vand.u32 4294901760, %v1420_v28  ;;  %v2862_v52 = vsub.f32 %v795_v16, %v2850_v19 }
  0xa1   : > { %1480 = vmatpush.msrb.mxu2 %v1402_v9  ;;  %1534 = vmatpush.msrb.mxu3 %v2759_v49  ;;  %v1307_v9 = vsub.f32 %v2837_v6, %v1306_v62 }
  0xa2   : > { %1291 = vmatpush.msrb.mxu0 %v2789_v5  ;;  %1388 = vmatpush.msrb.mxu1 %v1387_v29  ;;  %v1422_v18 = vsub.f32 %v1420_v28, %v2842_v15 }
  0xa3   : > { %1260 = vmatmul.f32.gmra.mxu3 %v2558_v59  ;;  %1483 = vmatpush.msrb.mxu2 %v1408_v10  ;;  %v1416_v59 = vsub.f32 %v1414_v24, %v2834_v60  ;;  %v1308_v57 = vand.u32 4294901760, %v1307_v9 }
  0xa4   : > { %1536 = vmatpush.msrb.mxu3 %v2771_v54  ;;  %1293 = vmatpush.msrb.mxu0 %v2801_v51 }
  0xa5   : > { %1394 = vmatpush.msrb.mxu1 %v1393_v40  ;;  %1486 = vmatpush.msrb.mxu2 %v1414_v24  ;;  %v1417_v1 = vand.u32 4294901760, %v1416_v59 }
  0xa6   : > { %1538 = vmatpush.msrb.mxu3 %v2789_v5  ;;  %1295 = vmatpush.msrb.mxu0 %v2810_v58 }
  0xa7   : > { %1400 = vmatpush.msrb.mxu1 %v1399_v38  ;;  %1301 = vmatmul.f32.vlgmr.msrb.gmra.mxu0 %v1300_v55 }
  0xa8   : > { %1130 = vmatmul.f32.gmra.mxu1 %v888_v41  ;;  %1489 = vmatpush.msrb.mxu2 %v1420_v28  ;;  %v1423_v41 = vand.u32 4294901760, %v1422_v18 }
  0xa9   : > { %1540 = vmatpush.msrb.mxu3 %v2801_v51  ;;  %1406 = vmatpush.msrb.mxu1 %v1405_v14 }
  0xaa   : > { %1571 = vmatpush.msra.mxu0 %v2661_v44  ;;  %1492 = vmatmul.f32.vlgmr.msrb.gmra.mxu2 %v2785_v7 }
  0xab   : > { %1542 = vmatpush.msrb.mxu3 %v2810_v58  ;;  %1819 = vmatpush.msra.mxu2 %v2661_v44  ;;  %v1314_v44 = vand.u32 4294901760, %v2862_v52 }
  0xac   : > { %1412 = vmatpush.msrb.mxu1 %v1411_v27  ;;  %1575 = vmatpush.msra.mxu0 %v2671_v48 }
  0xad   : > { %1546 = vmatmul.f32.vlgmr.msrb.gmra.mxu3 %v1298_v12  ;;  %1820 = vmatpush.msra.mxu2 %v2671_v48  ;;  %v390_v21 = vpop.f32.mrf.mxu0  ;;  %v2876_v48 = vand.u32 4294901760, %v797_v17 }
  0xae   : > { %1835 = vmatpush.msra.mxu3 %v2622_v39  ;;  %1418 = vmatpush.msrb.mxu1 %v1417_v1 }
  0xaf   : > { %1579 = vmatpush.msra.mxu0 %v2686_v50  ;;  %1821 = vmatpush.msra.mxu2 %v2686_v50  ;;  %v1315_v50 = vsub.f32 %v2862_v52, %v1314_v44  ;;  %v2887_v7 = vsub.f32 %v797_v17, %v2876_v48 }
  0xb0   : > { %1836 = vmatpush.msra.mxu3 %v2629_v36  ;;  %1424 = vmatpush.msrb.mxu1 %v1423_v41 }
  0xb1   : > { %1583 = vmatpush.msra.mxu0 %v2696_v11  ;;  %1426 = vmatmul.f32.vlgmr.msrb.gmra.mxu1 %v2761_v37  ;;  %v1316_v20 = vand.u32 4294901760, %v1315_v50  ;;  %v1322_v22 = vand.u32 4294901760, %v2887_v7 }
  0xb2   : > { %1309 = vmatmul.f32.gmra.mxu0 %v1308_v57  ;;  %1822 = vmatpush.msra.mxu2 %v2696_v11 }
  0xb3   : > { %1837 = vmatpush.msra.mxu3 %v2646_v3  ;;  %1587 = vmatpush.msra.mxu0 %v2713_v61 }
  0xb4   : > { %1650 = vmatpush.msra.mxu1 %v2622_v39  ;;  %1497 = vmatmul.f32.gmra.mxu2 %v2837_v6 }
  0xb5   : > { %1823 = vmatpush.msra.mxu2 %v2713_v61  ;;  %1838 = vmatpush.msra.mxu3 %v2653_v45 }
  0xb6   : > { %1591 = vmatpush.msra.mxu0 %v2723_v34  ;;  %1652 = vmatpush.msra.mxu1 %v2629_v36  ;;  %v581_v11 = vpop.f32.mrf.mxu2  ;;  %v635_v12 = vpop.f32.mrf.mxu3 }
  0xb7   : > { %1552 = vmatmul.f32.gmra.mxu3 %v1306_v62  ;;  %1824 = vmatpush.msra.mxu2 %v2723_v34  ;;  %v398_v39 = vpop.f32.mrf.mxu0  ;;  %v515_v10 = vpop.f32.mrf.mxu1 }
  0xb8   : > { %1839 = vmatpush.msra.mxu3 %v2673_v30  ;;  %1595 = vmatpush.msra.mxu0 %v2737_v2  ;;  %v516_v61 = vadd.f32 %v515_v10, %v390_v21 }
  0xb9   : > { %1654 = vmatpush.msra.mxu1 %v2646_v3  ;;  %1825 = vmatpush.msra.mxu2 %v2737_v2  ;;  %v1323_v3 = vsub.f32 %v2887_v7, %v1322_v22 }
  0xba   : > { %1840 = vmatpush.msra.mxu3 %v2680_v33  ;;  %1599 = vmatpush.msra.mxu0 %v2747_v42  ;;  %v582_v36 = vadd.f32 %v581_v11, %v516_v61 }
  0xbb   : > { %1656 = vmatpush.msra.mxu1 %v2653_v45  ;;  %1317 = vmatmul.f32.gmra.mxu0 %v1316_v20 }
  0xbc   : > { %1430 = vmatmul.f32.gmra.mxu1 %v2819_v25  ;;  %1826 = vmatpush.msra.mxu2 %v2747_v42  ;;  %v2902_v34 = vadd.f32 %v635_v12, %v582_v36  ;;  %v1324_v42 = vand.u32 4294901760, %v1323_v3 }
  0xbd   : > { %1841 = vmatpush.msra.mxu3 %v2698_v35  ;;  %1603 = vmatpush.msra.mxu0 %v2765_v23 }
  0xbe   : > { %1658 = vmatpush.msra.mxu1 %v2673_v30  ;;  %1502 = vmatmul.f32.gmra.mxu2 %v2862_v52 }
  0xbf   : > { %1827 = vmatpush.msra.mxu2 %v2765_v23  ;;  %1842 = vmatpush.msra.mxu3 %v2707_v0 }
  0xc0   : > { %1607 = vmatpush.msra.mxu0 %v2777_v47  ;;  %1660 = vmatpush.msra.mxu1 %v2680_v33  ;;  %v586_v45 = vpop.f32.mrf.mxu2  ;;  %v641_v2 = vpop.f32.mrf.mxu3 }
  0xc1   : > { %1558 = vmatmul.f32.gmra.mxu3 %v1314_v44  ;;  %1828 = vmatpush.msra.mxu2 %v2777_v47  ;;  %v406_v29 = vpop.f32.mrf.mxu0  ;;  %v519_v24 = vpop.f32.mrf.mxu1 }
  0xc2   : > { %1843 = vmatpush.msra.mxu3 %v2725_v56  ;;  %1611 = vmatpush.msra.mxu0 %v2792_v26  ;;  %v520_v30 = vadd.f32 %v519_v24, %v398_v39 }
  0xc3   : > { %1662 = vmatpush.msra.mxu1 %v2698_v35  ;;  %1829 = vmatpush.msra.mxu2 %v2792_v26 }
  0xc4   : > { %1844 = vmatpush.msra.mxu3 %v2731_v13  ;;  %1615 = vmatpush.msra.mxu0 %v2803_v46  ;;  %v587_v33 = vadd.f32 %v586_v45, %v520_v30 }
  0xc5   : > { %1664 = vmatpush.msra.mxu1 %v2707_v0  ;;  %1325 = vmatmul.f32.gmra.mxu0 %v1324_v42 }
  0xc6   : > { %1434 = vmatmul.f32.gmra.mxu1 %v2850_v19  ;;  %1830 = vmatpush.msra.mxu2 %v2803_v46  ;;  %v642_v23 = vadd.f32 %v641_v2, %v587_v33 }
  0xc7   : > { %1845 = vmatpush.msra.mxu3 %v2749_v8  ;;  %1619 = vmatpush.msra.mxu0 %v2813_v63 }
  0xc8   : > { %1666 = vmatpush.msra.mxu1 %v2725_v56  ;;  %1507 = vmatmul.f32.gmra.mxu2 %v2887_v7 }
  0xc9   : > { %1831 = vmatpush.msra.mxu2 %v2813_v63  ;;  %1846 = vmatpush.msra.mxu3 %v2759_v49 }
  0xca   : > { %1623 = vmatpush.msra.mxu0 %v2828_v4  ;;  %1668 = vmatpush.msra.mxu1 %v2731_v13  ;;  %v591_v35 = vpop.f32.mrf.mxu2  ;;  %v647_v0 = vpop.f32.mrf.mxu3 }
  0xcb   : > { %1564 = vmatmul.f32.gmra.mxu3 %v1322_v22  ;;  %1832 = vmatpush.msra.mxu2 %v2828_v4  ;;  %v414_v47 = vpop.f32.mrf.mxu0  ;;  %v523_v26 = vpop.f32.mrf.mxu1 }
  0xcc   : > { %1847 = vmatpush.msra.mxu3 %v2771_v54  ;;  %1627 = vmatpush.msra.mxu0 %v2834_v60  ;;  %v524_v56 = vadd.f32 %v523_v26, %v406_v29 }
  0xcd   : > { %1670 = vmatpush.msra.mxu1 %v2749_v8  ;;  %1833 = vmatpush.msra.mxu2 %v2834_v60 }
  0xce   : > { %1848 = vmatpush.msra.mxu3 %v2789_v5  ;;  %1631 = vmatpush.msra.mxu0 %v2842_v15  ;;  %v592_v13 = vadd.f32 %v591_v35, %v524_v56 }
  0xcf   : > { %1672 = vmatpush.msra.mxu1 %v2759_v49  ;;  %1834 = vmatpush.msra.mxu2 %v2842_v15 }
  0xd0   : > { %1438 = vmatmul.f32.gmra.mxu1 %v2876_v48  ;;  %1633 = vmatmul.f32.vlgmr.msra.gmra.mxu0 %v2761_v37  ;;  %v648_v46 = vadd.f32 %v647_v0, %v592_v13 }
  0xd1   : > { %1849 = vmatpush.msra.mxu3 %v2801_v51  ;;  %1674 = vmatpush.msra.mxu1 %v2771_v54 }
  0xd2   : > { %1641 = vmatmul.f32.vlgmr.msra.gmra.mxu2 %v2850_v19 }
  0xd3   : > { %1850 = vmatpush.msra.mxu3 %v2810_v58  ;;  %1676 = vmatpush.msra.mxu1 %v2789_v5 }
  0xd4   : > { %1690 = vmatmul.f32.vlgmr.msra.gmra.mxu3 %v2850_v19  ;;  %v596_v8 = vpop.f32.mrf.mxu2  ;;  %v653_v49 = vpop.f32.mrf.mxu3 }
  0xd5   : > { %1678 = vmatpush.msra.mxu1 %v2801_v51  ;;  %v527_v63 = vpop.f32.mrf.mxu1  ;;  %v722_v31 = vpop.f32.mrf.mxu0 }
  0xd6   : > { %v528_v32 = vadd.f32 %v527_v63, %v414_v47  ;;  %v723_v4 = vadd.f32 %v722_v31, %v2902_v34 }
  0xd7   : > { %1680 = vmatpush.msra.mxu1 %v2810_v58 }
  0xd8   : > { %1637 = vmatmul.f32.gmra.mxu0 %v2819_v25  ;;  %1682 = vmatmul.f32.vlgmr.msra.gmra.mxu1 %v2761_v37  ;;  %v597_v54 = vadd.f32 %v596_v8, %v528_v32 }
  0xda   : > { %1645 = vmatmul.f32.gmra.mxu2 %v2876_v48  ;;  %v654_v5 = vadd.f32 %v653_v49, %v597_v54 }
  0xdc   : > { %1694 = vmatmul.f32.gmra.mxu3 %v2876_v48 }
  0xde   : > { %v771_v28 = vpop.f32.mrf.mxu1  ;;  %v868_v40 = vpop.f32.mrf.mxu2 }
  0xdf   : > { %v726_v51 = vpop.f32.mrf.mxu0  ;;  %v2955_v43 = vadd.f32 %v771_v28, %v723_v4  ;;  %v993_v60 = vpop.f32.mrf.mxu3 }
  0xe0   : > { %1686 = vmatmul.f32.gmra.mxu1 %v2819_v25  ;;  %v727_v6 = vadd.f32 %v726_v51, %v642_v23  ;;  %v994_v58 = vadd.f32 %v993_v60, %v868_v40 }
  0xe7   : > { %v876_v38 = vpop.f32.mrf.mxu2 }
  0xe8   : > { %v730_v55 = vpop.f32.mrf.mxu0  ;;  %v997_v15 = vpop.f32.mrf.mxu3 }
  0xe9   : > { %v731_v37 = vadd.f32 %v730_v55, %v648_v46  ;;  %v775_v53 = vpop.f32.mrf.mxu1  ;;  %v998_v16 = vadd.f32 %v997_v15, %v876_v38  ;;  %v316_v15 = vld [vmem:[%s295_s26] sm:$0xff] }
  0xea   : > { %v2958_v14 = vadd.f32 %v775_v53, %v727_v6 }
  0xf1   : > { %v884_v59 = vpop.f32.mrf.mxu2 }
  0xf2   : > { %v734_v62 = vpop.f32.mrf.mxu0  ;;  %v1001_v1 = vpop.f32.mrf.mxu3 }
  0xf3   : > { %v735_v19 = vadd.f32 %v734_v62, %v654_v5  ;;  %v779_v27 = vpop.f32.mrf.mxu1  ;;  %v1002_v23 = vadd.f32 %v1001_v1, %v884_v59  ;;  %v318_v59 = vld [vmem:[%s295_s26 + $0x10] sm:$0xff] }
  0xf4   : > { %v2960_v18 = vadd.f32 %v779_v27, %v731_v37  ;;  %v321_v37 = vstv %s320_s7 }
  0xf5   : > { %v322_v27 = vmul.f32 %v321_v37, %v316_v15 }
  0xfb   : > { %v892_v9 = vpop.f32.mrf.mxu2 }
  0xfc   : > { %v1005_v41 = vpop.f32.mrf.mxu3  ;;  %v1059_v21 = vpop.f32.mrf.mxu0 }
  0xfd   : > { %v783_v52 = vpop.f32.mrf.mxu1  ;;  %v1060_v0 = vadd.f32 %v1059_v21, %v994_v58  ;;  %v1006_v49 = vadd.f32 %v1005_v41, %v892_v9  ;;  %v324_v41 = vmul.f32 %v321_v37, %v318_v59 }
  0xfe   : > { %v2962_v25 = vadd.f32 %v783_v52, %v735_v19  ;;  %v327_v52 = vstv %s1815_s23 }
 0x105   : > { %v1200_v57 = vpop.f32.mrf.mxu2 }
 0x106   : > { %v1113_v17 = vpop.f32.mrf.mxu1 }
 0x107   : > { %v1064_v48 = vpop.f32.mrf.mxu0  ;;  %v1114_v26 = vadd.f32 %v1113_v17, %v1060_v0 }
 0x108   : > { %v1249_v44 = vpop.f32.mrf.mxu3  ;;  %v1065_v32 = vadd.f32 %v1064_v48, %v998_v16 }
 0x109   : > { %v1201_v46 = vadd.f32 %v1200_v57, %v1114_v26 }
 0x10b   : > { %v1250_v5 = vadd.f32 %v1249_v44, %v1201_v46 }
 0x10f   : > { %v1204_v50 = vpop.f32.mrf.mxu2 }
 0x110   : > { %v1069_v12 = vpop.f32.mrf.mxu0 }
 0x111   : > { %v1119_v7 = vpop.f32.mrf.mxu1  ;;  %v1070_v47 = vadd.f32 %v1069_v12, %v1002_v23 }
 0x112   : > { %v1253_v11 = vpop.f32.mrf.mxu3  ;;  %v1120_v28 = vadd.f32 %v1119_v7, %v1065_v32  ;;  %v317_v7 = vld [vmem:[%s295_s26 + $0x8] sm:$0xff] }
 0x114   : > { %v1205_v58 = vadd.f32 %v1204_v50, %v1120_v28  ;;  %v328_v50 = vadd.f32 %v327_v52, %v322_v27 }
 0x116   : > { %v1254_v1 = vadd.f32 %v1253_v11, %v1205_v58  ;;  %v323_v11 = vmul.f32 %v321_v37, %v317_v7 }
 0x118   : > { %v329_v46 = vadd.f32 %v327_v52, %v323_v11 }
 0x119   : > { %v1208_v20 = vpop.f32.mrf.mxu2 }
 0x11a   : > { %v1074_v61 = vpop.f32.mrf.mxu0  ;;  %v787_v32 = vadd.f32 %v2958_v14, %v329_v46 }
 0x11b   : > { %v1125_v39 = vpop.f32.mrf.mxu1  ;;  %v1075_v4 = vadd.f32 %v1074_v61, %v1006_v49 }
 0x11c   : > { %v1257_v10 = vpop.f32.mrf.mxu3  ;;  %v1126_v56 = vadd.f32 %v1125_v39, %v1070_v47  ;;  %v330_v39 = vadd.f32 %v327_v52, %v324_v41 }
 0x11e   : > { %v1209_v63 = vadd.f32 %v1208_v20, %v1126_v56  ;;  %v788_v47 = vadd.f32 %v2960_v18, %v330_v39 }
 0x120   : > { %v1258_v40 = vadd.f32 %v1257_v10, %v1209_v63  ;;  %v319_v10 = vld [vmem:[%s295_s26 + $0x18] sm:$0xff] }
 0x121   : > { %v325_v23 = vmul.f32 %v321_v37, %v319_v10 }
 0x123   : > { %v1212_v22 = vpop.f32.mrf.mxu2 }
 0x124   : > { %v1302_v3 = vpop.f32.mrf.mxu0 }
 0x125   : > { %v1131_v36 = vpop.f32.mrf.mxu1  ;;  %v1303_v60 = vadd.f32 %v1302_v3, %v1250_v5 }
 0x126   : > { %v1261_v34 = vpop.f32.mrf.mxu3  ;;  %v1132_v51 = vadd.f32 %v1131_v36, %v1075_v4 }
 0x128   : > { %v1213_v53 = vadd.f32 %v1212_v22, %v1132_v51 }
 0x12a   : > { %v1262_v21 = vadd.f32 %v1261_v34, %v1213_v53  ;;  %v786_v34 = vadd.f32 %v2955_v43, %v328_v50  ;;  %v331_v43 = vadd.f32 %v327_v52, %v325_v23 }
 0x12c   : > { %v789_v5 = vadd.f32 %v2962_v25, %v331_v43 }
 0x12d   : > { %v1493_v45 = vpop.f32.mrf.mxu2 }
 0x12e   : > { %v1427_v2 = vpop.f32.mrf.mxu1 }
 0x12f   : > { %v1310_v29 = vpop.f32.mrf.mxu0  ;;  %v1428_v38 = vadd.f32 %v1427_v2, %v1303_v60 }
 0x130   : > { %v1547_v42 = vpop.f32.mrf.mxu3  ;;  %v1311_v44 = vadd.f32 %v1310_v29, %v1254_v1 }
 0x131   : > { %v1494_v9 = vadd.f32 %v1493_v45, %v1428_v38 }
 0x133   : > { %v1548_v12 = vadd.f32 %v1547_v42, %v1494_v9 }
 0x137   : > { %v1498_v24 = vpop.f32.mrf.mxu2 }
 0x138   : > { %v1318_v35 = vpop.f32.mrf.mxu0 }
 0x139   : > { %v1431_v30 = vpop.f32.mrf.mxu1  ;;  %v1319_v6 = vadd.f32 %v1318_v35, %v1258_v40 }
 0x13a   : > { %v2964_v33 = vpop.f32.mrf.mxu3  ;;  %v1432_v20 = vadd.f32 %v1431_v30, %v1311_v44 }
 0x13c   : > { %v1499_v35 = vadd.f32 %v1498_v24, %v1432_v20 }
 0x141   : > { %v1503_v13 = vpop.f32.mrf.mxu2 }
 0x142   : > { %v1326_v54 = vpop.f32.mrf.mxu0 }
 0x143   : > { %v1435_v8 = vpop.f32.mrf.mxu1  ;;  %v1327_v48 = vadd.f32 %v1326_v54, %v1262_v21 }
 0x144   : > { %v1559_v31 = vpop.f32.mrf.mxu3  ;;  %v1436_v16 = vadd.f32 %v1435_v8, %v1319_v6  ;;  %v1554_v8 = vadd.f32 %v2964_v33, %v1499_v35 }
 0x146   : > { %v1504_v57 = vadd.f32 %v1503_v13, %v1436_v16 }
 0x148   : > { %v1560_v61 = vadd.f32 %v1559_v31, %v1504_v57 }
 0x14b   : > { %v1508_v55 = vpop.f32.mrf.mxu2 }
 0x14d   : > { %v1439_v62 = vpop.f32.mrf.mxu1  ;;  %v1634_v17 = vpop.f32.mrf.mxu0 }
 0x14e   : > { %v1565_v19 = vpop.f32.mrf.mxu3  ;;  %v1440_v22 = vadd.f32 %v1439_v62, %v1327_v48  ;;  %v1635_v36 = vadd.f32 %v1634_v17, %v1548_v12 }
 0x150   : > { %v1509_v42 = vadd.f32 %v1508_v55, %v1440_v22 }
 0x152   : > { %v1566_v24 = vadd.f32 %v1565_v19, %v1509_v42 }
 0x155   : > { %v1642_v3 = vpop.f32.mrf.mxu2  ;;  %v1683_v2 = vpop.f32.mrf.mxu1 }
 0x156   : > { %v1643_v45 = vadd.f32 %v1642_v3, %v1560_v61  ;;  %v1684_v29 = vadd.f32 %v1683_v2, %v1635_v36  ;;  %v1638_v56 = vpop.f32.mrf.mxu0 }
 0x157   : > { %v1691_v0 = vpop.f32.mrf.mxu3  ;;  %v1639_v18 = vadd.f32 %v1638_v56, %v1554_v8 }
 0x158   : > { %v1692_v30 = vadd.f32 %v1691_v0, %v1643_v45  ;;  %v1698_v26 = vadd.f32 %v1684_v29, %v786_v34 }
 0x15a   : > { %v1700_v13 = vadd.f32 %v1692_v30, %v788_v47  ;;  %1703 = vst.msk [vmem:[%s314_s29] sm:$0xff] %vm1702_vm0, %v1698_v26 }
 0x15c   : > { %1705 = vst.msk [vmem:[%s314_s29 + $0x10] sm:$0xff] %vm1702_vm0, %v1700_v13 }
 0x15d   : > { %v1646_v49 = vpop.f32.mrf.mxu2  ;;  %v1687_v31 = vpop.f32.mrf.mxu1 }
 0x15e   : > { %v1647_v63 = vadd.f32 %v1646_v49, %v1566_v24  ;;  %v1688_v4 = vadd.f32 %v1687_v31, %v1639_v18 }
 0x15f   : > { %v1695_v54 = vpop.f32.mrf.mxu3 }
 0x160   : > { %v1696_v28 = vadd.f32 %v1695_v54, %v1647_v63  ;;  %v1699_v40 = vadd.f32 %v1688_v4, %v787_v32 }
 0x162   : > { %v1701_v51 = vadd.f32 %v1696_v28, %v789_v5  ;;  %1704 = vst.msk [vmem:[%s314_s29 + $0x8] sm:$0xff] %vm1702_vm0, %v1699_v40 }
 0x164   : > { %1706 = vst.msk [vmem:[%s314_s29 + $0x18] sm:$0xff] %vm1702_vm0, %v1701_v51 }
 0x165 PF: > { %s17_s21 = sadd.s32 1, %s1895_s21  }
 0x166   : > { %p14_p7 = scmp.ge.s32.totalorder %s17_s21, 6  }
 0x168   :  { %16 = sbr.rel (!%p14_p7) target bundleno = 1 (0x1), region = 85 }
 0x16d   :  { %1729 = vsyncpa [#allocation3], 1 }
 0x16e   :  { %1731 = vsyncpa [#allocation3 + $0x1], 1 }

</bundles_post_ra>
